<compile_context>
chip_gen: v7x
topology: tpu7x:2x2x1
jax: 0.10.0
libtpu: 0.0.40
codegen_flags: <defaults>
</compile_context>

<pallas_src>
import math
from types import SimpleNamespace as NS

import jax
import jax.numpy as jnp
from jax import lax
from jax.experimental import pallas as pl
from jax.experimental.pallas import tpu as pltpu

# ----- hard-concrete / L0 constants (same as LLM-Shearing Mask) --------------
LIMIT_A = -0.1
LIMIT_B = 1.1
EPS = 1e-6
TEMPERATURE = 2.0 / 3.0
LOG_MIN = math.log(1e-2)   # constrain_parameters clamp range
LOG_MAX = math.log(1e2)
_XN = (0.0 - LIMIT_A) / (LIMIT_B - LIMIT_A)
LOGITS_T = (math.log(_XN) - math.log(1.0 - _XN)) * TEMPERATURE  # cdf_qz(0) logit

MAX_COL_TILE = 2048        # lane tile (multiple of 128), per perf review


def _round_up(x, m):
    return ((x + m - 1) // m) * m


def _pick_col_tile(c_pad, max_tile=MAX_COL_TILE):
    """Largest multiple of 128 that divides c_pad and is <= max_tile."""
    n = c_pad // 128
    best = 1
    for d in range(1, n + 1):
        if n % d == 0 and d * 128 <= max_tile:
            best = d
    return best * 128


# ----------------------------- sample_z kernel --------------------------------
def _sample_kernel(zloga_ref, u_ref, z_ref):
    """Fused constrain_parameters + hard-concrete sample_z (elementwise)."""
    u = u_ref[...]
    zl = jnp.clip(zloga_ref[...], LOG_MIN, LOG_MAX)          # constrain_parameters fused
    noise = jnp.log(u / (1.0 - u))                           # 1 log instead of 2 (EUP-bound)
    s = jax.nn.sigmoid((noise + zl) * (1.0 / TEMPERATURE))
    s = s * (LIMIT_B - LIMIT_A) + LIMIT_A
    z_ref[...] = jnp.clip(s, 0.0, 1.0)                       # hardtanh


def _build_sample_call(r_pad, c_pad):
    c_tile = _pick_col_tile(c_pad)
    n_tiles = c_pad // c_tile
    tile_spec = lambda: pl.BlockSpec((r_pad, c_tile), lambda t: (0, t))
    return pl.pallas_call(
        _sample_kernel,
        out_shape=jax.ShapeDtypeStruct((r_pad, c_pad), jnp.float32),
        grid=(n_tiles,),
        in_specs=[tile_spec(), tile_spec()],
        out_specs=tile_spec(),
        compiler_params=pltpu.CompilerParams(
            dimension_semantics=("parallel",)),               # v7x: tiles across TCs
    )


# ----------------------------- lagrangian kernel -------------------------------
def _build_lagrangian_call(dims, pph_over_h, ppi_over_h):
    """dims: name -> (rows2d, cols2d, r_pad, c_pad). One launch, grid over
    column tiles of the intermediate mask; small masks stay resident."""
    h_r, h_c, h_rp, h_cp = dims["hidden"]
    hd_r, hd_c, hd_rp, hd_cp = dims["head"]
    hl_r, hl_c, hl_rp, hl_cp = dims["head_layer"]
    ml_r, ml_c, ml_rp, ml_cp = dims["mlp"]
    it_r, it_c, it_rp, it_cp = dims["intermediate"]
    c_tile = _pick_col_tile(it_cp)
    n_tiles = it_cp // c_tile

    def masked_score(block, rows, cols, col_off=0):
        """Expected score 1 - cdf_qz(0) with constrain_parameters fused, zeroed
        outside the valid (rows, cols) rectangle (per-tile iota, no full-slab)."""
        z = jnp.clip(block, LOG_MIN, LOG_MAX)
        cdf = jnp.clip(jax.nn.sigmoid(LOGITS_T - z), EPS, 1.0 - EPS)
        sc = 1.0 - cdf
        rid = lax.broadcasted_iota(jnp.int32, sc.shape, 0)
        cid = lax.broadcasted_iota(jnp.int32, sc.shape, 1) + col_off
        return jnp.where((rid < rows) & (cid < cols), sc, 0.0)

    def kernel(hidden_ref, head_ref, hl_ref, mlp_ref, int_ref,
               head_sp_ref, int_sp_ref, scal_ref):
        t = pl.program_id(0)
        nt = pl.num_programs(0)

        @pl.when(t == 0)
        def _init():
            int_sp_ref[...] = jnp.zeros(int_sp_ref.shape, jnp.float32)

        # --- accumulate intermediate row-sums for this column tile (lane 0) ---
        sc_it = masked_score(int_ref[...], it_r, it_c, col_off=t * c_tile)
        rs_it = jnp.sum(sc_it, axis=1, keepdims=True)               # (it_rp, 1)
        lane0 = lax.broadcasted_iota(jnp.int32, (it_rp, 128), 1) == 0
        int_sp_ref[...] += jnp.where(
            lane0, jnp.broadcast_to(rs_it, (it_rp, 128)), 0.0)

        # --- finalize everything on the last tile (small masks are resident) ---
        @pl.when(t == nt - 1)
        def _finalize():
            sc_h = masked_score(hidden_ref[...], h_r, h_c)
            hidden_sum = jnp.sum(sc_h)                               # scalar

            sc_hd = masked_score(head_ref[...], hd_r, hd_c)
            head_rs = jnp.sum(sc_hd, axis=1, keepdims=True)          # (L_pad, 1)

            sc_hl = masked_score(hl_ref[...], hl_r, hl_c)
            hl_rs = jnp.sum(sc_hl, axis=1, keepdims=True)            # (L_pad, 1)

            sc_ml = masked_score(mlp_ref[...], ml_r, ml_c)
            ml_rs = jnp.sum(sc_ml, axis=1, keepdims=True)            # (L_pad, 1)

            int_rowtot = jnp.sum(int_sp_ref[...], axis=1, keepdims=True)  # (L_pad, 1)

            # per-layer sparsities (lane-dense 128-wide outputs)
            head_sp_ref[...] = jnp.broadcast_to(
                1.0 - head_rs * (1.0 / hd_c), (hd_rp, 128))
            int_sp_ref[...] = jnp.broadcast_to(
                1.0 - int_rowtot * (1.0 / it_c), (it_rp, 128))

            hidden_spars = 1.0 - hidden_sum * (1.0 / h_c)
            hl_spars = 1.0 - jnp.sum(hl_rs) * (1.0 / hl_r)
            ml_spars = 1.0 - jnp.sum(ml_rs) * (1.0 / ml_r)

            # expected num params: outer(h, w).sum() == h.sum() * w.sum()
            w_head = jnp.sum(hl_rs * head_rs)
            w_int = jnp.sum(ml_rs * int_rowtot)
            expected = hidden_sum * (w_head * pph_over_h + w_int * ppi_over_h)

            rid8 = lax.broadcasted_iota(jnp.int32, (8, 128), 0)
            out = jnp.zeros((8, 128), jnp.float32)
            out = jnp.where(rid8 == 0, hidden_spars, out)
            out = jnp.where(rid8 == 1, hl_spars, out)
            out = jnp.where(rid8 == 2, ml_spars, out)
            out = jnp.where(rid8 == 3, expected, out)
            scal_ref[...] = out

    return pl.pallas_call(
        kernel,
        out_shape=(jax.ShapeDtypeStruct((hd_rp, 128), jnp.float32),   # head per-layer sparsity
                   jax.ShapeDtypeStruct((it_rp, 128), jnp.float32),   # intermediate per-layer sparsity
                   jax.ShapeDtypeStruct((8, 128), jnp.float32)),      # scalars slab
        grid=(n_tiles,),
        in_specs=[pl.BlockSpec((h_rp, h_cp), lambda t: (0, 0)),       # resident
                  pl.BlockSpec((hd_rp, hd_cp), lambda t: (0, 0)),     # resident
                  pl.BlockSpec((hl_rp, hl_cp), lambda t: (0, 0)),     # resident
                  pl.BlockSpec((ml_rp, ml_cp), lambda t: (0, 0)),     # resident
                  pl.BlockSpec((it_rp, c_tile), lambda t: (0, t))],   # tiled
        out_specs=(pl.BlockSpec((hd_rp, 128), lambda t: (0, 0)),
                   pl.BlockSpec((it_rp, 128), lambda t: (0, 0)),
                   pl.BlockSpec((8, 128), lambda t: (0, 0))),
        compiler_params=pltpu.CompilerParams(
            dimension_semantics=("arbitrary",)),   # reduction/accumulator axis
    )


# --------------------------- jitted host wrappers ------------------------------
def _make_train_forward(metas, sample_calls):
    def fwd(z_dict, key):
        zs = {}
        for i, meta in enumerate(metas):
            name = meta["name"]
            k = jax.random.fold_in(key, i)
            u = jax.random.uniform(k, (meta["r_pad"], meta["c_pad"]),
                                   jnp.float32, minval=EPS, maxval=1.0 - EPS)
            z2d = sample_calls[name](z_dict[name], u)
            z2d = z2d[:meta["rows2d"], :meta["cols2d"]]
            zs[f"{name}_z"] = z2d.reshape(meta["mask_output_shape"])
        return zs
    return jax.jit(fwd)


def _make_lagrangian_fn(metas, lag_call, prunable_model_size):
    names = [m["name"] for m in metas]
    by_name = {m["name"]: m for m in metas}
    head_rows = by_name["head"]["rows2d"]
    int_rows = by_name["intermediate"]["rows2d"]

    def lag(z_dict, l1_vec, l2_vec, ts_vec):
        head_sp, int_sp, scal = lag_call(
            z_dict["hidden"], z_dict["head"], z_dict["head_layer"],
            z_dict["mlp"], z_dict["intermediate"])
        per_mask_es = {
            "hidden": scal[0, 0],
            "head": head_sp[:head_rows, 0],
            "intermediate": int_sp[:int_rows, 0],
            "head_layer": scal[1, 0],
            "mlp": scal[2, 0],
        }
        loss = jnp.zeros((), jnp.float32)
        exp_means = []
        for i, name in enumerate(names):
            es = per_mask_es[name]
            diff = es - ts_vec[i]
            loss = loss + jnp.mean(l1_vec[i] * diff + l2_vec[i] * diff * diff)
            exp_means.append(jnp.mean(es))
        expected_size = scal[3, 0]
        expected_sparsity = 1.0 - expected_size / prunable_model_size
        return loss, jnp.stack(exp_means), expected_sparsity
    return jax.jit(lag)


# ------------------------------ module glue -----------------------------------
def set_model_info(cfg, n_matrix_mlp):
    ns = NS()
    ns.hidden_size = cfg['d_model']
    ns.intermediate_size = cfg['intermediate_size']
    ns.num_attention_heads = cfg['n_heads']
    ns.num_attention_kv_heads = cfg['n_kv_heads']
    ns.mlp_num_per_layer = 1
    ns.dim_per_head = ns.hidden_size // ns.num_attention_heads
    ns.num_layers = cfg['n_layers']
    ns.vocab_size = cfg['vocab_size']
    ns.params_per_head_layer = (ns.hidden_size * ns.dim_per_head *
                                (ns.num_attention_heads + ns.num_attention_kv_heads) * 2)
    ns.params_per_head = ns.params_per_head_layer // ns.num_attention_kv_heads
    ns.params_per_mlp_layer = ns.hidden_size * ns.intermediate_size * n_matrix_mlp
    ns.params_per_intermediate_dim = ns.params_per_mlp_layer // ns.intermediate_size
    ns.full_model_size = (ns.params_per_head_layer + ns.params_per_mlp_layer) * ns.num_layers
    return ns


class L0ModuleJax:
    FULL_SET = {'hidden', 'head', 'intermediate', 'head_layer', 'mlp'}

    def __init__(self, base_cfg, target_cfg, pruning_modules, key):
        n_matrix_mlp = 2 if 'pythia' in base_cfg['name'] else 3
        self.base = set_model_info(base_cfg, n_matrix_mlp)
        self.target = set_model_info(target_cfg, n_matrix_mlp)
        self.pruning_modules = list(pruning_modules)
        self.start_sparsity = 0.0
        self.lagrangian_warmup_steps = 100
        self.eval_target_model = True

        self.lambdas = {'lambda_1': jnp.zeros((), jnp.float32),
                        'lambda_2': jnp.zeros((), jnp.float32)}

        # ---- per-mask static metadata + per-mask (8,128)-padded z_loga ----
        self.metas = []
        self.z_loga = {}
        for i, pm in enumerate(self.pruning_modules):
            meta = self._make_meta(pm)
            z0 = (jax.random.normal(jax.random.fold_in(key, i),
                                    meta['mask_shape'], jnp.float32) * 0.01)
            zp = jnp.zeros((meta['r_pad'], meta['c_pad']), jnp.float32)
            zp = zp.at[:meta['rows2d'], :meta['cols2d']].set(
                z0.reshape(meta['rows2d'], meta['cols2d']))
            self.z_loga[pm] = zp
            self.metas.append(meta)
            self.lambdas[f'lambda_1_{pm}'] = jnp.zeros((), jnp.float32)
            self.lambdas[f'lambda_2_{pm}'] = jnp.zeros((), jnp.float32)
        self.masks = {m['name']: m for m in self.metas}

        self.prunable_model_size = self._prunable_size(self.base)
        self.prunable_target_model_size = self._prunable_size(self.target)
        self.target_sparsity = 1.0 - self.prunable_target_model_size / self.prunable_model_size

        # ---- compiled sample path: one elementwise kernel per padded shape ----
        shape_cache = {}
        sample_calls = {}
        for meta in self.metas:
            kshape = (meta['r_pad'], meta['c_pad'])
            if kshape not in shape_cache:
                shape_cache[kshape] = _build_sample_call(*kshape)
            sample_calls[meta['name']] = shape_cache[kshape]
        self._train_forward = _make_train_forward(self.metas, sample_calls)

        # ---- compiled lagrangian path ----
        if set(self.pruning_modules) == self.FULL_SET:
            dims = {m['name']: (m['rows2d'], m['cols2d'], m['r_pad'], m['c_pad'])
                    for m in self.metas}
            pph_over_h = self.masks['head']['num_params_per_mask'] / self.base.hidden_size
            ppi_over_h = self.masks['intermediate']['num_params_per_mask'] / self.base.hidden_size
            lag_call = _build_lagrangian_call(dims, pph_over_h, ppi_over_h)
            self._lagrangian_fn = _make_lagrangian_fn(
                self.metas, lag_call, float(self.prunable_model_size))
        else:
            # TODO(synk): 'layer' / qk_head_dim / vo_head_dim / no-hidden branches of
            # get_expected_num_params are not wired into the fused lagrangian kernel.
            self._lagrangian_fn = None

    # ---- mask metadata (mirrors initialize_* methods) ----
    def _make_meta(self, name):
        b, t = self.base, self.target
        if name == 'hidden':
            mask_shape = (b.hidden_size,)
            nppm = b.hidden_size * 4 + b.hidden_size * 4 * 2
            out_shape = (b.hidden_size,)
            tgt_sp = 1.0 - t.hidden_size / b.hidden_size
            tgt_size = t.hidden_size
            rows2d, cols2d = 1, b.hidden_size                 # row layout
        elif name == 'head':
            mask_shape = (b.num_layers, b.num_attention_kv_heads)
            nppm = b.params_per_head
            out_shape = (b.num_layers, 1, b.num_attention_kv_heads, 1)
            tgt_sp = 1.0 - t.num_attention_kv_heads / b.num_attention_kv_heads
            tgt_size = t.num_attention_kv_heads
            rows2d, cols2d = b.num_layers, b.num_attention_kv_heads
        elif name == 'intermediate':
            mask_shape = (b.num_layers, b.intermediate_size)
            nppm = b.params_per_intermediate_dim
            out_shape = (b.num_layers, 1, 1, b.intermediate_size)
            tgt_sp = 1.0 - t.intermediate_size / b.intermediate_size
            tgt_size = t.intermediate_size
            rows2d, cols2d = b.num_layers, b.intermediate_size
        elif name == 'head_layer':
            mask_shape = (b.num_layers,)
            nppm = b.params_per_head * b.num_attention_kv_heads
            out_shape = (b.num_layers,)
            tgt_sp = 1.0 - t.num_layers / b.num_layers
            tgt_size = t.num_layers
            rows2d, cols2d = b.num_layers, 1                  # column layout (aligns w/ head rows)
        elif name == 'mlp':
            mask_shape = (b.num_layers,)
            nppm = b.params_per_mlp_layer
            out_shape = (b.num_layers,)
            tgt_sp = 1.0 - t.num_layers / b.num_layers
            tgt_size = t.num_layers
            rows2d, cols2d = b.num_layers, 1
        else:
            # TODO(synk): 'layer', 'qk_head_dim', 'vo_head_dim' masks not implemented.
            raise NotImplementedError(name)
        r_pad = _round_up(rows2d, 8)
        c_pad = _round_up(cols2d, 128)
        return dict(name=name, mask_shape=mask_shape, mask_output_shape=out_shape,
                    num_params_per_mask=nppm, mask_size=mask_shape[-1],
                    target_sparsity=tgt_sp, target_mask_size=tgt_size,
                    rows2d=rows2d, cols2d=cols2d, r_pad=r_pad, c_pad=c_pad,
                    ndim=len(mask_shape))

    def _prunable_size(self, ns):
        prunable_mlp_size = ns.params_per_mlp_layer * ns.num_layers
        prunable_head_layer_size = ns.params_per_head_layer * ns.num_layers
        if 'hidden' in self.pruning_modules:
            return prunable_mlp_size + prunable_head_layer_size
        size = 0
        if 'head_layer' in self.pruning_modules or 'head' in self.pruning_modules:
            size += prunable_head_layer_size
        if 'mlp' in self.pruning_modules or 'intermediate' in self.pruning_modules:
            size += prunable_mlp_size
        return size

    def get_target_sparsity(self, pruned_steps, full_sparsity):
        ts = full_sparsity
        if self.lagrangian_warmup_steps > 0:
            ts = ((ts - self.start_sparsity) *
                  min(1.0, pruned_steps / self.lagrangian_warmup_steps) + self.start_sparsity)
        return ts

    # ---- lagrangian branch: one fused kernel, no host syncs ----
    def lagrangian_regularization(self, pruned_steps):
        if self._lagrangian_fn is None:
            raise NotImplementedError(
                "fused lagrangian kernel requires hidden/head/intermediate/head_layer/mlp")
        names = [m['name'] for m in self.metas]
        ts_list = [self.get_target_sparsity(pruned_steps, m['target_sparsity'])
                   for m in self.metas]
        ts_vec = jnp.asarray(ts_list, jnp.float32)
        l1_vec = jnp.stack([self.lambdas[f'lambda_1_{n}'] for n in names])
        l2_vec = jnp.stack([self.lambdas[f'lambda_2_{n}'] for n in names])

        loss, exp_means, expected_sparsity = self._lagrangian_fn(
            self.z_loga, l1_vec, l2_vec, ts_vec)

        return_v = {}
        for i, n in enumerate(names):
            return_v[f'expected_{n}_sparsity'] = exp_means[i]      # device scalar
            return_v[f'target_{n}_sparsity'] = ts_list[i]
        return_v['expected_sparsity'] = expected_sparsity          # device scalar
        return_v['target_sparsity'] = self.get_target_sparsity(pruned_steps, self.target_sparsity)
        return loss, return_v

    # ---- forward ----
    def forward(self, calculate_lagrangian=False, pruned_steps=0, training=True, rng=None):
        # constrain_parameters() is fused into the kernels as a clamp of z_loga.
        if calculate_lagrangian:
            return self.lagrangian_regularization(pruned_steps)
        if not training:
            # TODO(synk): eval-mode deterministic_z needs data-dependent top-k zeroing
            # (torch.topk + scatter); no clean Pallas equivalent implemented here.
            raise NotImplementedError("eval-mode deterministic_z not implemented")

        zs = dict(self._train_forward(self.z_loga, rng))
        if 'layer' in self.pruning_modules:
            zs['mlp_z'] = zs.pop('layer_z')
            zs['head_layer_z'] = zs['mlp_z']
        return zs


# ------------------------------------ main ------------------------------------
if __name__ == "__main__":
    BASE_CFG = dict(name='llama_small_test', d_model=64, intermediate_size=128,
                    n_heads=8, n_kv_heads=8, n_layers=4, vocab_size=512)
    TARGET_CFG = dict(name='llama_small_target', d_model=32, intermediate_size=64,
                      n_heads=4, n_kv_heads=4, n_layers=2, vocab_size=512)
    PRUNING_MODULES = ['hidden', 'head', 'intermediate', 'head_layer', 'mlp']

    key = jax.random.PRNGKey(0)
    module = L0ModuleJax(BASE_CFG, TARGET_CFG, PRUNING_MODULES, key)

    # training-mode forward: fused constrain + sample_z kernels (per-mask padding only)
    zs = module.forward(training=True, rng=jax.random.fold_in(key, 1234))
    jax.block_until_ready(zs)

    assert zs['hidden_z'].shape == (64,)
    assert zs['head_z'].shape == (4, 1, 8, 1)
    assert zs['intermediate_z'].shape == (4, 1, 1, 128)
    assert zs['head_layer_z'].shape == (4,)
    assert zs['mlp_z'].shape == (4,)
    for v in zs.values():
        assert v.dtype == jnp.float32
        assert bool(jnp.all(v >= 0.0)) and bool(jnp.all(v <= 1.0))

    # lagrangian branch: one fused score/sparsity + expected-size kernel
    loss, info = module.forward(calculate_lagrangian=True, pruned_steps=50)
    jax.block_until_ready((loss, info['expected_sparsity']))
    assert 'expected_sparsity' in info and 'target_sparsity' in info
    assert bool(jnp.isfinite(loss))
    assert bool(jnp.isfinite(info['expected_sparsity']))
    assert 0.0 <= float(info['expected_sparsity']) <= 1.0

    print("KERNEL_OK")
</pallas_src>

<mosaic_0001>
module attributes {stable_mosaic.version = 11 : i64} {
  func.func @_sample_kernel(%arg0: i32, %arg1: memref<8x128xf32, #tpu.memory_space<vmem>>, %arg2: memref<8x128xf32, #tpu.memory_space<vmem>>, %arg3: memref<8x128xf32, #tpu.memory_space<vmem>>) attributes {dimension_semantics = [#tpu.dimension_semantics<parallel>], iteration_bounds = array<i64: 1>, scalar_prefetch = 0 : i64, scratch_operands = 0 : i64, tpu.core_type = #tpu.core_type<tc>, window_params = [{transform_indices = @transform_0, window_bounds = array<i64: 8, 128>}, {transform_indices = @transform_1, window_bounds = array<i64: 8, 128>}, {transform_indices = @transform_2, window_bounds = array<i64: 8, 128>}]} {
    %c0 = arith.constant 0 : index
    %c0_0 = arith.constant 0 : index
    %0 = vector.load %arg2[%c0, %c0_0] : memref<8x128xf32, #tpu.memory_space<vmem>>, vector<8x128xf32>
    %c0_1 = arith.constant 0 : index
    %c0_2 = arith.constant 0 : index
    %1 = vector.load %arg1[%c0_1, %c0_2] : memref<8x128xf32, #tpu.memory_space<vmem>>, vector<8x128xf32>
    %cst = arith.constant -4.60517025 : f32
    %cst_3 = arith.constant 4.60517025 : f32
    %2 = vector.broadcast %cst : f32 to vector<8x128xf32>
    %3 = arith.maximumf %2, %1 : vector<8x128xf32>
    %4 = vector.broadcast %cst_3 : f32 to vector<8x128xf32>
    %5 = arith.minimumf %4, %3 : vector<8x128xf32>
    %cst_4 = arith.constant 1.000000e+00 : f32
    %6 = vector.broadcast %cst_4 : f32 to vector<8x128xf32>
    %7 = arith.subf %6, %0 : vector<8x128xf32>
    %8 = arith.divf %0, %7 : vector<8x128xf32>
    %9 = math.log %8 : vector<8x128xf32>
    %10 = arith.addf %9, %5 : vector<8x128xf32>
    %cst_5 = arith.constant 1.500000e+00 : f32
    %11 = vector.broadcast %cst_5 : f32 to vector<8x128xf32>
    %12 = arith.mulf %10, %11 : vector<8x128xf32>
    %13 = arith.negf %12 : vector<8x128xf32>
    %14 = math.exp %13 : vector<8x128xf32>
    %cst_6 = arith.constant 1.000000e+00 : f32
    %15 = vector.broadcast %cst_6 : f32 to vector<8x128xf32>
    %16 = arith.addf %15, %14 : vector<8x128xf32>
    %17 = arith.divf %15, %16 : vector<8x128xf32>
    %cst_7 = arith.constant 1.200000e+00 : f32
    %18 = vector.broadcast %cst_7 : f32 to vector<8x128xf32>
    %19 = arith.mulf %17, %18 : vector<8x128xf32>
    %cst_8 = arith.constant -1.000000e-01 : f32
    %20 = vector.broadcast %cst_8 : f32 to vector<8x128xf32>
    %21 = arith.addf %19, %20 : vector<8x128xf32>
    %cst_9 = arith.constant 0.000000e+00 : f32
    %cst_10 = arith.constant 1.000000e+00 : f32
    %22 = vector.broadcast %cst_9 : f32 to vector<8x128xf32>
    %23 = arith.maximumf %22, %21 : vector<8x128xf32>
    %24 = vector.broadcast %cst_10 : f32 to vector<8x128xf32>
    %25 = arith.minimumf %24, %23 : vector<8x128xf32>
    %c0_11 = arith.constant 0 : index
    %c0_12 = arith.constant 0 : index
    %26 = vector.load %arg3[%c0_11, %c0_12] : memref<8x128xf32, #tpu.memory_space<vmem>>, vector<8x128xf32>
    tpu.vector_store %arg3[%c0_11, %c0_12], %25 {strides = array<i32>} : memref<8x128xf32, #tpu.memory_space<vmem>>, vector<8x128xf32>,
    return
  }
  func.func @transform_0(%arg0: i32) -> (i32, i32) {
    %c0_i32 = arith.constant 0 : i32
    %c0_i32_0 = arith.constant 0 : i32
    return %c0_i32, %arg0 : i32, i32
  }
  func.func @transform_1(%arg0: i32) -> (i32, i32) {
    %c0_i32 = arith.constant 0 : i32
    %c0_i32_0 = arith.constant 0 : i32
    return %c0_i32, %arg0 : i32, i32
  }
  func.func @transform_2(%arg0: i32) -> (i32, i32) {
    %c0_i32 = arith.constant 0 : i32
    %c0_i32_0 = arith.constant 0 : i32
    return %c0_i32, %arg0 : i32, i32
  }
}

</mosaic_0001>

<bundles_post_ra>
// kernel: fwd.9
= control target key start
LH: loop header
LB: loop body
LE: loop exit
PB: predicated region body
PF: predicated region fallthrough
CT: control target
= control target key end

     0   :  { %s71_s1 = inlined_call_operand.vmem [shape: f32[8,128], index: 1, kind: input, shape index: {}]   ;;  %s72_s0 = inlined_call_operand.vmem [shape: f32[8,128], index: 0, kind: input, shape index: {}]   ;;  %s73_s2 = inlined_call_operand.vmem [shape: f32[8,128], index: 2, kind: output, shape index: {}]  }
   0x1   :  { %v11_v0 = vld [vmem:[%s71_s1] sm:$0xff] }
   0x2   :  { %v15_v1 = vsub.f32 1.0, %v11_v0  ;;  %v12_v4 = vld [vmem:[%s72_s0] sm:$0xff] }
   0x3   :  { %v37_v5 = vclamps-f32 %v12_v4, 4.6051702 }
   0x4   :  { %39 = vrcp.f32 %v15_v1 }
   0xe   :  { %v40_v2 = vpop.eup %39 }
   0xf   :  { %v17_v3 = vmul.f32 %v40_v2, %v11_v0 }
  0x11   :  { %41 = vlog2.f32 %v17_v3 }
  0x1b   :  { %v42_v6 = vpop.eup %41 }
  0x1c   :  { %v19_v7 = vmul.f32 0.6931472, %v42_v6 }
  0x1e   :  { %v20_v8 = vadd.f32 %v37_v5, %v19_v7 }
  0x20   :  { %v38_v9 = vmul.f32 -1.5, %v20_v8 }
  0x22   :  { %v23_v10 = vmul.f32 1.442695, %v38_v9 }
  0x24   :  { %43 = vpow2.f32 %v23_v10 }
  0x2e   :  { %v44_v11 = vpop.eup %43 }
  0x2f   :  { %v25_v12 = vadd.f32 1.0, %v44_v11 }
  0x31   :  { %45 = vrcp.f32 %v25_v12 }
  0x3b   :  { %v46_v13 = vpop.eup %45 }
  0x3c   :  { %v28_v14 = vmul.f32 1.2, %v46_v13 }
  0x3e   :  { %v29_v15 = vadd.f32 -0.1, %v28_v14 }
  0x40   :  { %v30_v16 = vmax.f32 %v29_v15, 0.0 }
  0x42   :  { %v31_v17 = vmin.f32 %v30_v16, 1.0 }
  0x44   :  { %32 = vst [vmem:[%s73_s2] sm:$0xff] %v31_v17 }

</bundles_post_ra>
